<compile_context>
chip_gen: v7x
topology: tpu7x:2x2x1
jax: 0.10.0
libtpu: 0.0.40
codegen_flags: <defaults>
</compile_context>

<pallas_src>
import jax
import jax.numpy as jnp
from jax.experimental import pallas as pl
from jax.experimental.pallas import tpu as pltpu


def attn_head_kernel(xq_ref, xk_ref, xv_ref,
                     wq_ref, wk_ref, wv_ref,
                     bq_ref, bk_ref, bv_ref,
                     out_ref):
    B, S, D_in = xq_ref.shape
    D_k = wq_ref.shape[1]
    D_v = wv_ref.shape[1]
    cd = jnp.bfloat16  # MXU-native operand dtype; accumulate in f32.

    # Fold the batch into the matmul M dimension for better MXU row occupancy.
    xq2 = xq_ref[...].reshape(B * S, D_in).astype(cd)
    xk2 = xk_ref[...].reshape(B * S, D_in).astype(cd)
    xv2 = xv_ref[...].reshape(B * S, D_in).astype(cd)

    # Linear projections: y = x @ W_t + b.  Weights are already bf16 (cast
    # offline) and Wq/bq already carry the 1/sqrt(D_k) scale.  Bias add in f32.
    q = (jnp.dot(xq2, wq_ref[...], preferred_element_type=jnp.float32)
         + bq_ref[...]).reshape(B, S, D_k)
    k = (jnp.dot(xk2, wk_ref[...], preferred_element_type=jnp.float32)
         + bk_ref[...]).reshape(B, S, D_k)
    v = (jnp.dot(xv2, wv_ref[...], preferred_element_type=jnp.float32)
         + bv_ref[...]).reshape(B, S, D_v)

    # scores = (q / sqrt(D_k)) @ k^T   (scale already folded into q).
    scores = jnp.einsum('bqd,bkd->bqk', q.astype(cd), k.astype(cd),
                        preferred_element_type=jnp.float32)      # (B, S, S)

    # Numerically-stable softmax in f32.
    m = jnp.max(scores, axis=-1, keepdims=True)
    p = jnp.exp(scores - m)
    denom = jnp.sum(p, axis=-1, keepdims=True)
    attn = p * pl.reciprocal(denom, approx=False)

    out_ref[...] = jnp.einsum('bqk,bkd->bqd', attn.astype(cd), v.astype(cd),
                              preferred_element_type=jnp.float32)  # (B, S, D_v)


def prepare_params(wq, bq, wk, bk, wv, bv):
    """One-time offline parameter prep (NOT in the per-call hot path):
    fold the 1/sqrt(D_k) attention scale into Wq/bq and cast weights to bf16.
    Biases stay f32 (added to the f32 MXU accumulation; tiny DMA)."""
    d_k = wq.shape[1]
    scale = 1.0 / (float(d_k) ** 0.5)   # true D_k
    wq_p = (wq * scale).astype(jnp.bfloat16)
    wk_p = wk.astype(jnp.bfloat16)
    wv_p = wv.astype(jnp.bfloat16)
    bq_p = (bq * scale).astype(jnp.float32)
    bk_p = bk.astype(jnp.float32)
    bv_p = bv.astype(jnp.float32)
    return wq_p, bq_p, wk_p, bk_p, wv_p, bv_p


def attention_head(xq, xk, xv, wq_p, bq_p, wk_p, bk_p, wv_p, bv_p):
    """xq/xk/xv: (B, S, D_in) f32.  wq_p/wk_p: (D_in, D_k) bf16, wv_p:
    (D_in, D_v) bf16 (nn.Linear weights pre-transposed; Wq pre-scaled).
    bq_p/bk_p: (1, D_k) f32, bv_p: (1, D_v) f32 (bq pre-scaled).
    Returns (B, S, D_v) f32.  Single kernel invocation, whole arrays in VMEM."""
    B, S, _ = xq.shape
    D_v = wv_p.shape[1]
    vmem_specs = [pl.BlockSpec(memory_space=pltpu.MemorySpace.VMEM)
                  for _ in range(9)]
    return pl.pallas_call(
        attn_head_kernel,
        out_shape=jax.ShapeDtypeStruct((B, S, D_v), jnp.float32),
        in_specs=vmem_specs,
        out_specs=pl.BlockSpec(memory_space=pltpu.MemorySpace.VMEM),
    )(xq, xk, xv, wq_p, wk_p, wv_p, bq_p, bk_p, bv_p)


def _reference(xq, xk, xv, wq, bq, wk, bk, wv, bv):
    q = jnp.einsum("bsd,dk->bsk", xq, wq) + bq
    k = jnp.einsum("bsd,dk->bsk", xk, wk) + bk
    v = jnp.einsum("bsd,dk->bsk", xv, wv) + bv
    scores = jnp.einsum("bqk,bjk->bqj", q, k) / (q.shape[-1] ** 0.5)
    p = jax.nn.softmax(scores, axis=-1)
    return jnp.einsum("bqj,bjd->bqd", p, v)


if __name__ == "__main__":
    # Small shapes consistent with the module's forward.
    B, S, D_IN, D_K, D_V = 2, 16, 32, 32, 32

    key = jax.random.PRNGKey(0)
    keys = jax.random.split(key, 9)

    # inputs (query/key/value activations)
    xq = jax.random.uniform(keys[0], (B, S, D_IN), dtype=jnp.float32)
    xk = jax.random.normal(keys[1], (B, S, D_IN), dtype=jnp.float32)
    xv = jax.random.uniform(keys[2], (B, S, D_IN), dtype=jnp.float32)

    # Deterministic Linear params (nn.Linear: weight (out,in), bias (out,)).
    # Stored here pre-transposed to (in, out); biases as (1, out).
    bound = 1.0 / (D_IN ** 0.5)
    wq = jax.random.uniform(keys[3], (D_IN, D_K), jnp.float32, -bound, bound)
    wk = jax.random.uniform(keys[4], (D_IN, D_K), jnp.float32, -bound, bound)
    wv = jax.random.uniform(keys[5], (D_IN, D_V), jnp.float32, -bound, bound)
    bq = jax.random.uniform(keys[6], (1, D_K), jnp.float32, -bound, bound)
    bk = jax.random.uniform(keys[7], (1, D_K), jnp.float32, -bound, bound)
    bv = jax.random.uniform(keys[8], (1, D_V), jnp.float32, -bound, bound)

    # Offline parameter prep (scale folding + bf16 cast) — done once.
    wq_p, bq_p, wk_p, bk_p, wv_p, bv_p = prepare_params(wq, bq, wk, bk, wv, bv)

    out = attention_head(xq, xk, xv, wq_p, bq_p, wk_p, bk_p, wv_p, bv_p)
    out = jax.block_until_ready(out)

    ref = _reference(xq, xk, xv, wq, bq, wk, bk, wv, bv)
    assert out.shape == (B, S, D_V)
    # bf16 MXU operands (f32 accumulation) trade ~1e-2 absolute error vs the
    # all-f32 reference for MXU throughput; tolerance documents this.
    assert jnp.allclose(out, ref, atol=2e-2, rtol=2e-2), (
        float(jnp.max(jnp.abs(out - ref))))

    print("KERNEL_OK")
</pallas_src>

<mosaic_0001>
module attributes {stable_mosaic.version = 11 : i64} {
  func.func @attn_head_kernel(%arg0: memref<2x16x32xf32, #tpu.memory_space<vmem>>, %arg1: memref<2x16x32xf32, #tpu.memory_space<vmem>>, %arg2: memref<2x16x32xf32, #tpu.memory_space<vmem>>, %arg3: memref<32x32xbf16, #tpu.memory_space<vmem>>, %arg4: memref<32x32xbf16, #tpu.memory_space<vmem>>, %arg5: memref<32x32xbf16, #tpu.memory_space<vmem>>, %arg6: memref<1x32xf32, #tpu.memory_space<vmem>>, %arg7: memref<1x32xf32, #tpu.memory_space<vmem>>, %arg8: memref<1x32xf32, #tpu.memory_space<vmem>>, %arg9: memref<2x16x32xf32, #tpu.memory_space<vmem>>) attributes {dimension_semantics = [], scalar_prefetch = 0 : i64, scratch_operands = 0 : i64, tpu.core_type = #tpu.core_type<tc>} {
    %c0 = arith.constant 0 : index
    %c0_0 = arith.constant 0 : index
    %c0_1 = arith.constant 0 : index
    %0 = vector.load %arg0[%c0, %c0_0, %c0_1] : memref<2x16x32xf32, #tpu.memory_space<vmem>>, vector<2x16x32xf32>
    %1 = vector.shape_cast %0 : vector<2x16x32xf32> to vector<32x32xf32>
    %2 = arith.truncf %1 : vector<32x32xf32> to vector<32x32xbf16>
    %c0_2 = arith.constant 0 : index
    %c0_3 = arith.constant 0 : index
    %c0_4 = arith.constant 0 : index
    %3 = vector.load %arg1[%c0_2, %c0_3, %c0_4] : memref<2x16x32xf32, #tpu.memory_space<vmem>>, vector<2x16x32xf32>
    %4 = vector.shape_cast %3 : vector<2x16x32xf32> to vector<32x32xf32>
    %5 = arith.truncf %4 : vector<32x32xf32> to vector<32x32xbf16>
    %c0_5 = arith.constant 0 : index
    %c0_6 = arith.constant 0 : index
    %c0_7 = arith.constant 0 : index
    %6 = vector.load %arg2[%c0_5, %c0_6, %c0_7] : memref<2x16x32xf32, #tpu.memory_space<vmem>>, vector<2x16x32xf32>
    %7 = vector.shape_cast %6 : vector<2x16x32xf32> to vector<32x32xf32>
    %8 = arith.truncf %7 : vector<32x32xf32> to vector<32x32xbf16>
    %c0_8 = arith.constant 0 : index
    %c0_9 = arith.constant 0 : index
    %9 = vector.load %arg3[%c0_8, %c0_9] : memref<32x32xbf16, #tpu.memory_space<vmem>>, vector<32x32xbf16>
    %cst = arith.constant dense<0.000000e+00> : vector<32x32xf32>
    %10 = tpu.matmul %2, %9, %cst {dimension_numbers = #tpu.dot_dimension_numbers<[1], [0], [0], [1], [0, 0, 1, 1], [], []>} : vector<32x32xbf16>, vector<32x32xbf16>, vector<32x32xf32> -> vector<32x32xf32>
    %c0_10 = arith.constant 0 : index
    %c0_11 = arith.constant 0 : index
    %11 = vector.load %arg6[%c0_10, %c0_11] : memref<1x32xf32, #tpu.memory_space<vmem>>, vector<1x32xf32>
    %12 = vector.broadcast %11 : vector<1x32xf32> to vector<32x32xf32>
    %13 = arith.addf %10, %12 : vector<32x32xf32>
    %14 = vector.shape_cast %13 : vector<32x32xf32> to vector<2x16x32xf32>
    %c0_12 = arith.constant 0 : index
    %c0_13 = arith.constant 0 : index
    %15 = vector.load %arg4[%c0_12, %c0_13] : memref<32x32xbf16, #tpu.memory_space<vmem>>, vector<32x32xbf16>
    %cst_14 = arith.constant dense<0.000000e+00> : vector<32x32xf32>
    %16 = tpu.matmul %5, %15, %cst_14 {dimension_numbers = #tpu.dot_dimension_numbers<[1], [0], [0], [1], [0, 0, 1, 1], [], []>} : vector<32x32xbf16>, vector<32x32xbf16>, vector<32x32xf32> -> vector<32x32xf32>
    %c0_15 = arith.constant 0 : index
    %c0_16 = arith.constant 0 : index
    %17 = vector.load %arg7[%c0_15, %c0_16] : memref<1x32xf32, #tpu.memory_space<vmem>>, vector<1x32xf32>
    %18 = vector.broadcast %17 : vector<1x32xf32> to vector<32x32xf32>
    %19 = arith.addf %16, %18 : vector<32x32xf32>
    %20 = vector.shape_cast %19 : vector<32x32xf32> to vector<2x16x32xf32>
    %c0_17 = arith.constant 0 : index
    %c0_18 = arith.constant 0 : index
    %21 = vector.load %arg5[%c0_17, %c0_18] : memref<32x32xbf16, #tpu.memory_space<vmem>>, vector<32x32xbf16>
    %cst_19 = arith.constant dense<0.000000e+00> : vector<32x32xf32>
    %22 = tpu.matmul %8, %21, %cst_19 {dimension_numbers = #tpu.dot_dimension_numbers<[1], [0], [0], [1], [0, 0, 1, 1], [], []>} : vector<32x32xbf16>, vector<32x32xbf16>, vector<32x32xf32> -> vector<32x32xf32>
    %c0_20 = arith.constant 0 : index
    %c0_21 = arith.constant 0 : index
    %23 = vector.load %arg8[%c0_20, %c0_21] : memref<1x32xf32, #tpu.memory_space<vmem>>, vector<1x32xf32>
    %24 = vector.broadcast %23 : vector<1x32xf32> to vector<32x32xf32>
    %25 = arith.addf %22, %24 : vector<32x32xf32>
    %26 = vector.shape_cast %25 : vector<32x32xf32> to vector<2x16x32xf32>
    %27 = arith.truncf %14 : vector<2x16x32xf32> to vector<2x16x32xbf16>
    %28 = arith.truncf %20 : vector<2x16x32xf32> to vector<2x16x32xbf16>
    "tpu.trace_start"() <{level = 10 : i32, message = "bqd,bkd->bqk"}> : () -> ()
    %cst_22 = arith.constant dense<0.000000e+00> : vector<2x16x16xf32>
    %29 = tpu.matmul %27, %28, %cst_22 {dimension_numbers = #tpu.dot_dimension_numbers<[2], [2], [1], [1], [0, 0, 0, 1, 1, 1], [0], [0]>} : vector<2x16x32xbf16>, vector<2x16x32xbf16>, vector<2x16x16xf32> -> vector<2x16x16xf32>
    "tpu.trace_stop"() : () -> ()
    %cst_23 = arith.constant dense<0xFF800000> : vector<2x16xf32>
    %30 = vector.multi_reduction <maximumf>, %29, %cst_23 [2] : vector<2x16x16xf32> to vector<2x16xf32>
    %31 = vector.shape_cast %30 : vector<2x16xf32> to vector<2x16x1xf32>
    %32 = vector.broadcast %31 : vector<2x16x1xf32> to vector<2x16x16xf32>
    %33 = arith.subf %29, %32 : vector<2x16x16xf32>
    %34 = math.exp %33 : vector<2x16x16xf32>
    %cst_24 = arith.constant dense<0.000000e+00> : vector<2x16xf32>
    %35 = vector.multi_reduction <add>, %34, %cst_24 [2] : vector<2x16x16xf32> to vector<2x16xf32>
    %36 = vector.shape_cast %35 : vector<2x16xf32> to vector<2x16x1xf32>
    %37 = tpu.reciprocal %36 : vector<2x16x1xf32> -> vector<2x16x1xf32>
    %38 = vector.broadcast %37 : vector<2x16x1xf32> to vector<2x16x16xf32>
    %39 = arith.mulf %34, %38 : vector<2x16x16xf32>
    %40 = arith.truncf %39 : vector<2x16x16xf32> to vector<2x16x16xbf16>
    %41 = arith.truncf %26 : vector<2x16x32xf32> to vector<2x16x32xbf16>
    "tpu.trace_start"() <{level = 10 : i32, message = "bqk,bkd->bqd"}> : () -> ()
    %cst_25 = arith.constant dense<0.000000e+00> : vector<2x16x32xf32>
    %42 = tpu.matmul %40, %41, %cst_25 {dimension_numbers = #tpu.dot_dimension_numbers<[2], [1], [1], [2], [0, 0, 0, 1, 1, 2], [0], [0]>} : vector<2x16x16xbf16>, vector<2x16x32xbf16>, vector<2x16x32xf32> -> vector<2x16x32xf32>
    "tpu.trace_stop"() : () -> ()
    %c0_26 = arith.constant 0 : index
    %c0_27 = arith.constant 0 : index
    %c0_28 = arith.constant 0 : index
    %43 = vector.load %arg9[%c0_26, %c0_27, %c0_28] : memref<2x16x32xf32, #tpu.memory_space<vmem>>, vector<2x16x32xf32>
    tpu.vector_store %arg9[%c0_26, %c0_27, %c0_28], %42 {strides = array<i32>} : memref<2x16x32xf32, #tpu.memory_space<vmem>>, vector<2x16x32xf32>,
    return
  }
}

</mosaic_0001>

<bundles_post_ra>
// kernel: tpu_custom_call.1
= control target key start
LH: loop header
LB: loop body
LE: loop exit
PB: predicated region body
PF: predicated region fallthrough
CT: control target
= control target key end

     0   :  { %14 = vsyncpa [#allocation3], 0  ;;  %s1083_s0 = inlined_call_operand.hbm [shape: f32[2,16,32], index: 0, kind: input, shape index: {}]   ;;  %s1084_s1 = inlined_call_operand.hbm [shape: f32[2,16,32], index: 1, kind: input, shape index: {}]   ;;  %s1085_s2 = inlined_call_operand.hbm [shape: f32[2,16,32], index: 2, kind: input, shape index: {}]   ;;  %s1086_s3 = inlined_call_operand.hbm [shape: bf16[32,32], index: 3, kind: input, shape index: {}]   ;;  %s1087_s4 = inlined_call_operand.hbm [shape: bf16[32,32], index: 4, kind: input, shape index: {}]   ;;  %s1088_s5 = inlined_call_operand.vmem [shape: bf16[32,32], index: 5, kind: input, shape index: {}]   ;;  %s1089_s6 = inlined_call_operand.vmem [shape: f32[1,32], index: 6, kind: input, shape index: {}]   ;;  %s1090_s7 = inlined_call_operand.vmem [shape: f32[1,32], index: 7, kind: input, shape index: {}]   ;;  %s1091_s8 = inlined_call_operand.vmem [shape: f32[1,32], index: 8, kind: input, shape index: {}]   ;;  %s1092_s9 = inlined_call_operand.hbm [shape: f32[2,16,32], index: 9, kind: output, shape index: {}]  }
   0x1   :  { %15 = vsyncpa [#allocation6], 0 }
   0x2   :  { %16 = vsyncpa [#allocation9], 0 }
   0x3   :  { %17 = vsyncpa [#allocation4], 0  ;;  %s874_s30 = smov [#allocation5]   ;;  %s875_s11 = smov [#allocation8]  }
   0x4   :  { %s35_s10 = sshll.u32 %s874_s30, 4  ;;  %s59_s12 = sshll.u32 %s875_s11, 4  ;;  %s36_s10 = int_to_ptr.vmem [resolvable:$true] %s35_s10  ;;  %s936_s12 = int_to_ptr.vmem [resolvable:$true] %s59_s12 }
   0x5   :  { %s734_s15 = scalar_lea.hbm %s1084_s1, 512 }
   0x6   :  { %p735_p0 = scmp.ne.s32.totalorder %s1084_s1, %s734_s15  ;;  %p738_p1 = scmp.lt.u32.totalorder %s734_s15, %s1084_s1 }
   0x8   :  { %p740_p2 = pnand %p738_p1, %p735_p0 }
   0xa   :  { %743 = shalt.err (!%p740_p2)
}
   0xb   :  { %s744_s20 = scalar_lea.vmem %s36_s10, 512  ;;  %p749_p4 = scmp.lt.s32.totalorder %s36_s10, %s36_s10 }
   0xc   :  { %p745_p3 = scmp.ne.s32.totalorder %s36_s10, %s744_s20  ;;  %p750_p5 = scmp.lt.s32.totalorder %s744_s20, %s744_s20 }
   0xe   :  { %p751_p6 = por %p750_p5, %p749_p4 }
  0x10   :  { %p752_p7 = pnand %p751_p6, %p745_p3 }
  0x12   :  { %755 = shalt.err (!%p752_p7)
}
  0x13   :  { %s876_s21 = smov 128   ;;  %s877_s22 = smov 8  }
  0x14   :  { %41 = dma.hbm_to_vmem [thread:$0]  %s1084_s1, 512, %s36_s10, [#allocation6], %s876_s21, %s876_s21, %s877_s22  }
  0x15   :  { %s756_s27 = scalar_lea.hbm %s1086_s3, 256 }
  0x16   :  { %p757_p8 = scmp.ne.s32.totalorder %s1086_s3, %s756_s27  ;;  %p760_p9 = scmp.lt.u32.totalorder %s756_s27, %s1086_s3 }
  0x18   :  { %p762_p10 = pnand %p760_p9, %p757_p8 }
  0x1a   :  { %765 = shalt.err (!%p762_p10)
}
  0x1b   :  { %s766_s13 = scalar_lea.vmem %s936_s12, 256  ;;  %p771_p12 = scmp.lt.s32.totalorder %s936_s12, %s936_s12 }
  0x1c   :  { %p767_p11 = scmp.ne.s32.totalorder %s936_s12, %s766_s13  ;;  %p772_p13 = scmp.lt.s32.totalorder %s766_s13, %s766_s13 }
  0x1e   :  { %p773_p0 = por %p772_p13, %p771_p12 }
  0x20   :  { %p774_p1 = pnand %p773_p0, %p767_p11 }
  0x22   :  { %777 = shalt.err (!%p774_p1)
}
  0x23   :  { %s878_s1 = smov 64   ;;  %s879_s10 = smov 4  }
  0x24   :  { %65 = dma.hbm_to_vmem [thread:$0]  %s1086_s3, 256, %s936_s12, [#allocation9], %s878_s1, %s878_s1, %s879_s10  }
  0x25   :  { %s880_s16 = smov [#allocation2]   ;;  %s881_s18 = smov [#allocation7]  }
  0x26   :  { %s23_s17 = sshll.u32 %s880_s16, 4  ;;  %s47_s19 = sshll.u32 %s881_s18, 4  ;;  %s24_s17 = int_to_ptr.vmem [resolvable:$true] %s23_s17  ;;  %s973_s19 = int_to_ptr.vmem [resolvable:$true] %s47_s19 }
  0x27   :  { %s778_s24 = scalar_lea.hbm %s1083_s0, 512 }
  0x28   :  { %p779_p2 = scmp.ne.s32.totalorder %s1083_s0, %s778_s24  ;;  %p782_p3 = scmp.lt.u32.totalorder %s778_s24, %s1083_s0 }
  0x2a   :  { %p784_p4 = pnand %p782_p3, %p779_p2 }
  0x2c   :  { %787 = shalt.err (!%p784_p4)
}
  0x2d   :  { %s788_s3 = scalar_lea.vmem %s24_s17, 512  ;;  %p793_p6 = scmp.lt.s32.totalorder %s24_s17, %s24_s17 }
  0x2e   :  { %p789_p5 = scmp.ne.s32.totalorder %s24_s17, %s788_s3  ;;  %p794_p7 = scmp.lt.s32.totalorder %s788_s3, %s788_s3 }
  0x30   :  { %p795_p8 = por %p794_p7, %p793_p6 }
  0x32   :  { %p796_p9 = pnand %p795_p8, %p789_p5 }
  0x34   :  { %799 = shalt.err (!%p796_p9)
}
  0x35   :  { %29 = dma.hbm_to_vmem [thread:$0]  %s1083_s0, 512, %s24_s17, [#allocation3], %s876_s21, %s876_s21, %s877_s22  }
  0x36   :  { %s800_s13 = scalar_lea.hbm %s1085_s2, 512 }
  0x37   :  { %p801_p10 = scmp.ne.s32.totalorder %s1085_s2, %s800_s13  ;;  %p804_p11 = scmp.lt.u32.totalorder %s800_s13, %s1085_s2 }
  0x39   :  { %p806_p12 = pnand %p804_p11, %p801_p10 }
  0x3b   :  { %809 = shalt.err (!%p806_p12)
}
  0x3c   :  { %s810_s20 = scalar_lea.vmem %s973_s19, 512  ;;  %p815_p0 = scmp.lt.s32.totalorder %s973_s19, %s973_s19 }
  0x3d   :  { %p811_p13 = scmp.ne.s32.totalorder %s973_s19, %s810_s20  ;;  %p816_p1 = scmp.lt.s32.totalorder %s810_s20, %s810_s20 }
  0x3f   :  { %p817_p2 = por %p816_p1, %p815_p0 }
  0x41   :  { %p818_p3 = pnand %p817_p2, %p811_p13 }
  0x43   :  { %821 = shalt.err (!%p818_p3)
}
  0x44   :  { %53 = dma.hbm_to_vmem [thread:$0]  %s1085_s2, 512, %s973_s19, [#allocation6], %s876_s21, %s876_s21, %s877_s22  }
  0x45   :  { %s882_s23 = smov [#allocation10]   ;;  %s822_s27 = scalar_lea.hbm %s1087_s4, 256 }
  0x46   :  { %s71_s24 = sshll.u32 %s882_s23, 4  ;;  %p823_p4 = scmp.ne.s32.totalorder %s1087_s4, %s822_s27  ;;  %s72_s24 = int_to_ptr.vmem [resolvable:$true] %s71_s24 }
  0x47   :  { %p826_p5 = scmp.lt.u32.totalorder %s822_s27, %s1087_s4 }
  0x49   :  { %p828_p6 = pnand %p826_p5, %p823_p4 }
  0x4b   :  { %831 = shalt.err (!%p828_p6)
}
  0x4c   :  { %s832_s30 = scalar_lea.vmem %s72_s24, 256  ;;  %p837_p8 = scmp.lt.s32.totalorder %s72_s24, %s72_s24 }
  0x4d   :  { %p833_p7 = scmp.ne.s32.totalorder %s72_s24, %s832_s30  ;;  %p838_p9 = scmp.lt.s32.totalorder %s832_s30, %s832_s30 }
  0x4f   :  { %p839_p10 = por %p838_p9, %p837_p8 }
  0x51   :  { %p840_p11 = pnand %p839_p10, %p833_p7 }
  0x53   :  { %843 = shalt.err (!%p840_p11)
}
  0x54   :  { %77 = dma.hbm_to_vmem [thread:$0]  %s1087_s4, 256, %s72_s24, [#allocation9], %s878_s1, %s878_s1, %s879_s10  }
  0x55   :  { %866 = dma.done.wait [#allocation3], 512  }
  0x56   :  { %867 = vsyncadd [#allocation3], 4294966784 }
  0x57   :  { %868 = dma.done.wait [#allocation6], 1024  }
  0x58   :  { %869 = vsyncadd [#allocation6], 4294966272 }
  0x59   :  { %870 = dma.done.wait [#allocation9], 512  }
  0x5a   :  { %871 = vsyncadd [#allocation9], 4294966784  ;;  %v712_v0 = vld [vmem:[#allocation10] sm:$0xff]   ;;  %v713_v1 = vld [vmem:[#allocation10 + $0x8] sm:$0xff]   ;;  %vm143_vm0 = vcmask 261120   ;;  %v883_v24 = vmov 0.0  }
  0x5b   :  { %660 = vmatprep.subr.bf16.mxu1 %v712_v0  ;;  %v714_v2 = vld [vmem:[#allocation8] sm:$0xff]   ;;  %v109_v4 = vld [vmem:[#allocation5 + $0x8] sm:$0xff]  ;;  %v110_v5 = vld [vmem:[#allocation5 + $0x10] sm:$0xff]  ;;  %vm884_vm1 = vmmov 0   ;;  %vm453_vm2 = vcmask 130048  }
  0x5c   :  { %661 = vmatpush3.bf16.msra.mxu1 %v712_v0  ;;  %v108_v3 = vld [vmem:[#allocation5] sm:$0xff]  ;;  %652 = vmatprep.subr.bf16.mxu0 %v714_v2  ;;  %v111_v7 = vld [vmem:[#allocation5 + $0x18] sm:$0xff]  ;;  %v715_v8 = vld [vmem:[#allocation8 + $0x8] sm:$0xff]  }
  0x5d   :  { %662 = vmatprep.subr.bf16.mxu1 %v713_v1  ;;  %v112_v6 = vpack.c.bf16 %v109_v4, %v108_v3  ;;  %653 = vmatpush3.bf16.msra.mxu0 %v714_v2  ;;  %v102_v9 = vld [vmem:[#allocation2] sm:$0xff]  ;;  %v103_v10 = vld [vmem:[#allocation2 + $0x8] sm:$0xff]  ;;  %v113_v11 = vpack.c.bf16 %v111_v7, %v110_v5  ;;  %v104_v13 = vld [vmem:[#allocation2 + $0x10] sm:$0xff] }
  0x5e   :  { %v106_v12 = vpack.c.bf16 %v103_v10, %v102_v9  ;;  %v105_v14 = vld [vmem:[#allocation2 + $0x18] sm:$0xff]  ;;  %654 = vmatprep.subr.bf16.mxu0 %v715_v8  ;;  %v716_v15 = vld [vmem:[%s1088_s5] sm:$0xff]   ;;  %v717_v17 = vld [vmem:[%s1088_s5 + $0x8] sm:$0xff]  }
  0x5f   :  { %664 = vmatprep.mubr.msk.bf16.mxu1 %vm143_vm0, %v112_v6  ;;  %v107_v16 = vpack.c.bf16 %v105_v14, %v104_v13  ;;  %v114_v18 = vld [vmem:[#allocation7] sm:$0xff]  ;;  %v115_v19 = vld [vmem:[#allocation7 + $0x8] sm:$0xff]  ;;  %v116_v21 = vld [vmem:[#allocation7 + $0x10] sm:$0xff] }
  0x60   :  { %663 = vmatpush3.bf16.msra.mxu1 %v713_v1  ;;  %656 = vmatprep.mubr.msk.bf16.mxu0 %vm143_vm0, %v106_v12  ;;  %v118_v20 = vpack.c.bf16 %v115_v19, %v114_v18  ;;  %v117_v22 = vld [vmem:[#allocation7 + $0x18] sm:$0xff]  ;;  %v618_v26 = vld [vmem:[%s1090_s7] ss:$0 sm:$0xff] }
  0x61   :  { %655 = vmatpush3.bf16.msra.mxu0 %v715_v8  ;;  %v119_v23 = vpack.c.bf16 %v117_v22, %v116_v21  ;;  %676 = vmatprep.subr.bf16.mxu1 %v883_v24  ;;  %v613_v27 = vld [vmem:[%s1089_s6] ss:$0 sm:$0xff] }
  0x62   :  { %668 = vmatprep.subr.bf16.mxu0 %v716_v15  ;;  %v623_v49 = vld [vmem:[%s1091_s8] ss:$0 sm:$0xff]  ;;  %s885_s8 = smov [#allocation11]  }
  0x63   :  { %665 = vmatmul.mubr.msk.bf16.vlgmr.msra.gmra.mrb[0].mxu1 %vm143_vm0, %v113_v11  ;;  %s599_s16 = sshll.u32 %s885_s8, 4  ;;  %s600_s16 = int_to_ptr.vmem [resolvable:$true] %s599_s16 }
  0x64   :  { %657 = vmatmul.mubr.msk.bf16.vlgmr.msra.gmra.mrb[0].mxu0 %vm143_vm0, %v107_v16  ;;  %678 = vmatprep.mubr.msk.bf16.mxu1 %vm884_vm1, %v883_v24  ;;  %s844_s18 = scalar_lea.vmem %s600_s16, 512  ;;  %p849_p13 = scmp.lt.s32.totalorder %s600_s16, %s600_s16 }
  0x65   :  { %669 = vmatpush3.bf16.msra.mxu0 %v716_v15  ;;  %672 = vmatprep.mubr.msk.bf16.mxu0 %vm143_vm0, %v118_v20  ;;  %p845_p12 = scmp.ne.s32.totalorder %s600_s16, %s844_s18  ;;  %p850_p0 = scmp.lt.s32.totalorder %s844_s18, %s844_s18 }
  0x66   :  { %670 = vmatprep.subr.bf16.mxu0 %v717_v17 }
  0x67   :  { %p851_p1 = por %p850_p0, %p849_p13 }
  0x69   :  { %671 = vmatpush3.bf16.msra.mxu0 %v717_v17  ;;  %p852_p2 = pnand %p851_p1, %p845_p12 }
  0x6a   :  { %682 = vmatprep.subr.bf16.mxu0 %v883_v24 }
  0x6c   :  { %673 = vmatmul.mubr.msk.bf16.vlgmr.msra.gmra.mrb[4].mxu0 %vm143_vm0, %v119_v23 }
  0x6d   :  { %684 = vmatprep.mubr.msk.bf16.mxu0 %vm884_vm1, %v883_v24 }
 0x136   :  { %v666_v25 = vpop.f32.mrb[0].mxu1 }
 0x137   :  { %v262_v28 = vpop.f32.mrb[1].mxu1  ;;  %v658_v30 = vpop.f32.mrb[0].mxu0  ;;  %v271_v31 = vadd.f32 %v666_v25, %v618_v26 }
 0x138   :  { %v667_v29 = vpop.f32.mrb[2].mxu1  ;;  %v193_v34 = vadd.f32 %v658_v30, %v613_v27  ;;  %v184_v35 = vpop.f32.mrb[1].mxu0  ;;  %v263_v36 = vadd.f32 %v618_v26, %v262_v28 }
 0x139   :  { %v274_v32 = vadd.f32 %v667_v29, %v618_v26  ;;  %v265_v33 = vpop.f32.mrb[3].mxu1  ;;  %v185_v38 = vadd.f32 %v613_v27, %v184_v35  ;;  %v659_v39 = vpop.f32.mrb[2].mxu0 }
 0x13a   :  { %v266_v37 = vadd.f32 %v618_v26, %v265_v33  ;;  %v196_v41 = vadd.f32 %v659_v39, %v613_v27  ;;  %v187_v42 = vpop.f32.mrb[3].mxu0 }
 0x13b   :  { %v358_v40 = vpack.c.bf16 %v274_v32, %v271_v31  ;;  %v188_v44 = vadd.f32 %v613_v27, %v187_v42 }
 0x13c   :  { %v357_v43 = vpack.c.bf16 %v266_v37, %v263_v36  ;;  %v356_v45 = vpack.c.bf16 %v196_v41, %v193_v34 }
 0x13d   :  { %v410_v46 = vsel %vm143_vm0, %v358_v40, 0  ;;  %v355_v47 = vpack.c.bf16 %v188_v44, %v185_v38 }
 0x13e   :  { %683 = vmatpush3.bf16.xpose.msra.mxu0 %v410_v46  ;;  %v363_v48 = vsel %vm143_vm0, %v357_v43, 0 }
 0x13f   :  { %677 = vmatpush3.bf16.xpose.msra.mxu1 %v363_v48  ;;  %694 = vmatprep.subr.bf16.mxu0 %v883_v24  ;;  %v674_v50 = vpop.f32.mrb[4].mxu0 }
 0x140   :  { %688 = vmatprep.subr.bf16.mxu1 %v883_v24  ;;  %v349_v51 = vadd.f32 %v674_v50, %v623_v49  ;;  %v340_v52 = vpop.f32.mrb[5].mxu0 }
 0x141   :  { %v341_v53 = vadd.f32 %v623_v49, %v340_v52  ;;  %v675_v54 = vpop.f32.mrb[6].mxu0 }
 0x142   :  { %v352_v55 = vadd.f32 %v675_v54, %v623_v49  ;;  %v343_v56 = vpop.f32.mrb[7].mxu0 }
 0x143   :  { %v344_v57 = vadd.f32 %v623_v49, %v343_v56 }
 0x144   :  { %v501_v58 = vpack.c.bf16 %v352_v55, %v349_v51 }
 0x145   :  { %685 = vmatmul.mubr.msk.bf16.vlgmr.msra.gmra.mrb[8].mxu0 %vm143_vm0, %v356_v45  ;;  %v500_v59 = vpack.c.bf16 %v344_v57, %v341_v53 }
 0x146   :  { %679 = vmatmul.mubr.msk.bf16.vlgmr.msra.gmra.mrb[4].mxu1 %vm143_vm0, %v355_v47  ;;  %696 = vmatprep.mubr.msk.bf16.mxu0 %vm884_vm1, %v883_v24 }
 0x147   :  { %690 = vmatprep.mubr.msk.bf16.mxu1 %vm884_vm1, %v883_v24  ;;  %695 = vmatpush3.bf16.msra.mxu0 %v501_v58 }
 0x148   :  { %689 = vmatpush3.bf16.msra.mxu1 %v500_v59 }
 0x218   :  { %v446_v60 = vpop.f32.mrb[8].mxu0 }
 0x219   :  { %v399_v61 = vpop.f32.mrb[4].mxu1  ;;  %v686_v62 = vpop.f32.mrb[9].mxu0  ;;  %v460_v63 = vsel %vm453_vm2, %v446_v60, -inf }
 0x21a   :  { %461 = vmax.xlane.f32.xlu1 %v460_v63  ;;  %v680_v0 = vpop.f32.mrb[5].mxu1  ;;  %v449_v1 = vpop.f32.mrb[10].mxu0  ;;  %v454_v2 = vsel %vm453_vm2, %v399_v61, -inf }
 0x21b   :  { %v687_v3 = vpop.f32.mrb[11].mxu0  ;;  %455 = vmax.xlane.f32.xlu0 %v454_v2  ;;  %v402_v4 = vpop.f32.mrb[6].mxu1  ;;  %v463_v6 = vsel %vm453_vm2, %v449_v1, -inf }
 0x21c   :  { %v681_v5 = vpop.f32.mrb[7].mxu1  ;;  %v457_v7 = vsel %vm453_vm2, %v402_v4, -inf }
 0x21e   :  { %464 = vmax.xlane.f32.xlu1 %v463_v6 }
 0x21f   :  { %458 = vmax.xlane.f32.xlu0 %v457_v7 }
 0x2a7   :  { %v462_v8 = vpop.xlane.xlu1 %461 }
 0x2a8   :  { %v468_v9 = vsub.f32 %v446_v60, %v462_v8  ;;  %v456_v10 = vpop.xlane.xlu0 %455 }
 0x2a9   :  { %v466_v11 = vsub.f32 %v399_v61, %v456_v10 }
 0x2aa   :  { %v474_v12 = vmul.f32 1.442695, %v468_v9 }
 0x2ab   :  { %v470_v13 = vmul.f32 1.442695, %v466_v11  ;;  %v465_v14 = vpop.xlane.xlu1 %464 }
 0x2ac   :  { %v469_v15 = vsub.f32 %v449_v1, %v465_v14  ;;  %v459_v16 = vpop.xlane.xlu0 %458 }
 0x2ad   :  { %718 = vpow2.f32 %v470_v13  ;;  %v467_v17 = vsub.f32 %v402_v4, %v459_v16 }
 0x2ae   :  { %720 = vpow2.f32 %v474_v12  ;;  %v476_v18 = vmul.f32 1.442695, %v469_v15 }
 0x2af   :  { %v472_v19 = vmul.f32 1.442695, %v467_v17 }
 0x2b1   :  { %722 = vpow2.f32 %v472_v19 }
 0x2b2   :  { %724 = vpow2.f32 %v476_v18 }
 0x2b7   :  { %v719_v20 = vpop.eup %718 }
 0x2b8   :  { %v478_v21 = vsel %vm453_vm2, %v719_v20, 0.0  ;;  %v721_v22 = vpop.eup %720 }
 0x2b9   :  { %479 = vadd.xlane.f32.xlu0 %v478_v21  ;;  %v484_v24 = vsel %vm453_vm2, %v721_v22, 0.0 }
 0x2bb   :  { %v723_v23 = vpop.eup %722 }
 0x2bc   :  { %v481_v25 = vsel %vm453_vm2, %v723_v23, 0.0  ;;  %v725_v26 = vpop.eup %724 }
 0x2bd   :  { %485 = vadd.xlane.f32.xlu0 %v484_v24  ;;  %482 = vadd.xlane.f32.xlu1 %v481_v25  ;;  %v487_v27 = vsel %vm453_vm2, %v725_v26, 0.0 }
 0x2c1   :  { %488 = vadd.xlane.f32.xlu1 %v487_v27 }
 0x346   :  { %v480_v28 = vpop.xlane.xlu0 %479 }
 0x347   :  { %726 = vrcp.f32 %v480_v28 }
 0x34a   :  { %v483_v29 = vpop.xlane.xlu1 %482  ;;  %v486_v30 = vpop.xlane.xlu0 %485 }
 0x34b   :  { %728 = vrcp.f32 %v483_v29 }
 0x34c   :  { %730 = vrcp.f32 %v486_v30 }
 0x34e   :  { %v489_v31 = vpop.xlane.xlu1 %488 }
 0x34f   :  { %732 = vrcp.f32 %v489_v31 }
 0x351   :  { %v727_v32 = vpop.eup %726 }
 0x352   :  { %v494_v34 = vmul.f32 %v727_v32, %v719_v20 }
 0x355   :  { %v729_v33 = vpop.eup %728 }
 0x356   :  { %v495_v35 = vmul.f32 %v729_v33, %v723_v23  ;;  %v731_v36 = vpop.eup %730 }
 0x357   :  { %v496_v39 = vmul.f32 %v731_v36, %v721_v22 }
 0x358   :  { %v498_v37 = vpack.c.bf16 %v495_v35, %v494_v34 }
 0x359   :  { %v733_v38 = vpop.eup %732 }
 0x35a   :  { %v497_v40 = vmul.f32 %v733_v38, %v725_v26  ;;  %691 = vmatmul.mubr.msk.bf16.vlgmr.msra.gmra.mrb[8].mxu1 %vm453_vm2, %v498_v37 }
 0x35c   :  { %v499_v41 = vpack.c.bf16 %v497_v40, %v496_v39 }
 0x35e   :  { %697 = vmatmul.mubr.msk.bf16.vlgmr.msra.gmra.mrb[12].mxu0 %vm453_vm2, %v499_v41 }
 0x42d   :  { %v539_v42 = vpop.f32.mrb[8].mxu1 }
 0x42e   :  { %590 = vst.msk [vmem:[#allocation11] sm:$0xff] %vm143_vm0, %v539_v42  ;;  %v692_v43 = vpop.f32.mrb[9].mxu1 }
 0x42f   :  { %v542_v44 = vpop.f32.mrb[10].mxu1 }
 0x430   :  { %591 = vst.msk [vmem:[#allocation11 + $0x8] sm:$0xff] %vm143_vm0, %v542_v44  ;;  %v693_v45 = vpop.f32.mrb[11].mxu1 }
 0x431   :  { %v583_v46 = vpop.f32.mrb[12].mxu0 }
 0x432   :  { %592 = vst.msk [vmem:[#allocation11 + $0x10] sm:$0xff] %vm143_vm0, %v583_v46  ;;  %v698_v47 = vpop.f32.mrb[13].mxu0 }
 0x433   :  { %v586_v48 = vpop.f32.mrb[14].mxu0 }
 0x434   :  { %593 = vst.msk [vmem:[#allocation11 + $0x18] sm:$0xff] %vm143_vm0, %v586_v48  ;;  %v699_v49 = vpop.f32.mrb[15].mxu0 }
 0x435   :  { %855 = shalt.err (!%p852_p2)
}
 0x436   :  { %s856_s17 = scalar_lea.hbm %s1092_s9, 512 }
 0x437   :  { %p857_p3 = scmp.ne.s32.totalorder %s1092_s9, %s856_s17  ;;  %p860_p4 = scmp.lt.u32.totalorder %s856_s17, %s1092_s9 }
 0x439   :  { %p862_p5 = pnand %p860_p4, %p857_p3 }
 0x43b   :  { %865 = shalt.err (!%p862_p5)
}
 0x43c   :  { %605 = dma.vmem_to_hbm [thread:$0]  %s600_s16, 512, %s1092_s9, [#allocation4], %s876_s21, %s876_s21, %s877_s22  }
 0x43d   :  { %872 = dma.done.wait [#allocation4], 512  }
 0x43e   :  { %873 = vsyncadd [#allocation4], 4294966784 }
 0x43f   :  { %609 = vsyncpa [#allocation3], 1 }
 0x440   :  { %610 = vsyncpa [#allocation6], 1 }
 0x441   :  { %611 = vsyncpa [#allocation9], 1 }
 0x442   :  { %612 = vsyncpa [#allocation4], 1 }

</bundles_post_ra>
